<compile_context>
chip_gen: v6e
topology: v6e:2x2x1
jax: 0.10.0
libtpu: 0.0.40
codegen_flags: <defaults>
</compile_context>

<pallas_src>
import functools

import jax
import jax.numpy as jnp
from jax.experimental import pallas as pl
from jax.experimental.pallas import tpu as pltpu


# Scoped-VMEM request: above v5e's 16 MiB default, comfortably inside v7x's
# 64 MiB physical VMEM per TensorCore (and v5e/v6e's 128 MiB).
_VMEM_LIMIT_BYTES = 48 * 1024 * 1024

# A (N, 1) int32 column occupies 512 B/row in VMEM due to (8,128) tiling; keep
# the target fully resident only while that stays a few MiB.
_MAX_RESIDENT_TARGET_ROWS = 8192


def _lsce_kernel(pred_ref, tgt_ref, loss_ref, *, on_value, off_value):
    """Per-row label-smoothed cross entropy for one (TN, C) block of logits."""
    tn, c = pred_ref.shape

    # Target rows for this block.  If the (padded) target is kept fully resident
    # in VMEM (single up-front DMA), slice this block's rows; otherwise it is
    # already the (TN, 1) block delivered by the pipeline.
    if tgt_ref.shape[0] == tn:
        tgt = tgt_ref[...]                                     # (TN, 1) int32
    else:
        start = pl.multiple_of(pl.program_id(0) * tn, tn)
        tgt = tgt_ref[pl.ds(start, tn), :]                     # (TN, 1) int32

    x = pred_ref[...].astype(jnp.float32)                      # (TN, C) f32 math

    # Numerically stable log-sum-exp (max + sum-exp reductions; exp/log on EUP).
    m = jnp.max(x, axis=-1, keepdims=True)                                   # (TN, 1)
    lse = m + jnp.log(jnp.sum(jnp.exp(x - m), axis=-1, keepdims=True))       # (TN, 1)

    # Single fused weighted row-sum over the *raw* logits:
    #   loss_i = sum_w * lse_i - sum_c w[i,c] * x[i,c]
    #   w[i,c] = on if c == t_i else off,   sum_w = on + (C-1)*off
    col = jax.lax.broadcasted_iota(jnp.int32, (tn, c), 1)
    wsum = jnp.sum(jnp.where(col == tgt, on_value, off_value) * x,
                   axis=-1, keepdims=True)                                   # (TN, 1)

    sum_w = on_value + (c - 1) * off_value                     # compile-time scalar
    loss_ref[...] = sum_w * lse - wsum


def _choose_tile_rows(n, c, dtype):
    """Pick the batch tile.

    * ~4 MiB of input-dtype logits per block (>=85% of HBM roofline; amortizes
      the ~0.35 us per-grid-step overhead), sized by the *input* itemsize so
      bf16 inputs are not penalized.
    * Cap each full-width f32 temporary at ~4 MiB so double-buffered input plus
      a few f32 temps stay well inside the 48 MiB scoped-VMEM request (v7x is
      the binding generation).
    * Multiple of 16 rows so bf16 sublane-pair packing never needs fixups
      (also satisfies f32's 8-row requirement).
    """
    itemsize = jnp.dtype(dtype).itemsize
    row_in = max(c * itemsize, 1)
    row_f32 = max(c * 4, 1)
    tn = min((4 << 20) // row_in, (4 << 20) // row_f32)
    tn = max(16, min(4096, (tn // 16) * 16))
    # Never larger than the (aligned) batch; the grid handles the ragged tail.
    align = 16 if itemsize < 4 else 8
    n_cap = max(align, ((n + align - 1) // align) * align)
    return min(tn, n_cap)


def npu_label_smoothing_cross_entropy(pred, target, *, num_classes,
                                      smooth_factor=0.0, tile_rows=None):
    """JAX/Pallas equivalent of NPULabelSmoothingCrossEntropy.forward.

    Args:
      pred:   (N, C) float logits (f32 or bf16 — no wrapper upcast or pad).
      target: (N,) integer class labels.
    Returns:
      scalar float32 mean loss.
    """
    on_value = 1.0 - smooth_factor
    # Guard the num_classes==1 degenerate case (module itself would divide by 0).
    off_value = (1.0 * smooth_factor / (num_classes - 1)) if num_classes > 1 else 0.0

    n, c = pred.shape
    if tile_rows is not None:
        tn = max(8, ((int(tile_rows) + 7) // 8) * 8)
    else:
        tn = _choose_tile_rows(n, c, pred.dtype)
    grid_n = pl.cdiv(n, tn)
    n_pad = grid_n * tn

    # Only the tiny int32 target is padded; the (N, C) logits are never copied.
    tgt2d = target.astype(jnp.int32).reshape(n, 1)
    if n_pad != n:
        tgt2d = jnp.pad(tgt2d, ((0, n_pad - n), (0, 0)))

    if n_pad <= _MAX_RESIDENT_TARGET_ROWS:
        # Full-extent, VMEM-resident target: one DMA, no per-step descriptors.
        tgt_spec = pl.BlockSpec((n_pad, 1), lambda i: (0, 0))
    else:
        tgt_spec = pl.BlockSpec((tn, 1), lambda i: (i, 0))

    kernel = functools.partial(_lsce_kernel, on_value=on_value, off_value=off_value)

    per_row = pl.pallas_call(
        kernel,
        out_shape=jax.ShapeDtypeStruct((n, 1), jnp.float32),
        grid=(grid_n,),
        in_specs=[
            pl.BlockSpec((tn, c), lambda i: (i, 0)),   # logits row-tile (pipelined)
            tgt_spec,                                  # targets
        ],
        out_specs=pl.BlockSpec((tn, 1), lambda i: (i, 0)),
        compiler_params=pltpu.CompilerParams(
            dimension_semantics=("parallel",),         # v7x: both TCs split rows
            vmem_limit_bytes=_VMEM_LIMIT_BYTES),
    )(pred, tgt2d)

    # Mean over the true batch rows in plain JAX; per-block outputs (instead of a
    # shared scalar accumulator) are what keep the grid axis "parallel".
    return jnp.mean(per_row[:, 0])


def _reference(pred, target, *, num_classes, smooth_factor):
    on_value = 1.0 - smooth_factor
    off_value = smooth_factor / (num_classes - 1)
    one_hot = jnp.where(
        jax.nn.one_hot(target, num_classes, dtype=jnp.bool_), on_value, off_value
    ).astype(jnp.float32)
    logp = jax.nn.log_softmax(pred.astype(jnp.float32), axis=-1)
    loss = -jnp.sum(one_hot * logp, axis=-1)
    return jnp.mean(loss)


if __name__ == "__main__":
    num_classes = 16
    smooth_factor = 0.1

    key = jax.random.PRNGKey(0)
    k1, k2, k3, k4, k5, k6 = jax.random.split(key, 6)

    # 1) Basic f32 case, single block.
    pred = jax.random.normal(k1, (8, num_classes), dtype=jnp.float32)
    target = jax.random.randint(k2, (8,), 0, num_classes, dtype=jnp.int32)
    loss = jax.block_until_ready(npu_label_smoothing_cross_entropy(
        pred, target, num_classes=num_classes, smooth_factor=smooth_factor))
    ref = _reference(pred, target, num_classes=num_classes, smooth_factor=smooth_factor)
    assert jnp.allclose(loss, ref, atol=1e-5, rtol=1e-5), (loss, ref)

    # 2) Ragged batch + multi-block grid (no logits padding; clipped tail block,
    #    resident-target slicing path).
    pred2 = jax.random.normal(k3, (10, num_classes), dtype=jnp.float32)
    target2 = jax.random.randint(k4, (10,), 0, num_classes, dtype=jnp.int32)
    loss2 = jax.block_until_ready(npu_label_smoothing_cross_entropy(
        pred2, target2, num_classes=num_classes, smooth_factor=smooth_factor,
        tile_rows=8))
    ref2 = _reference(pred2, target2, num_classes=num_classes, smooth_factor=smooth_factor)
    assert jnp.allclose(loss2, ref2, atol=1e-5, rtol=1e-5), (loss2, ref2)

    # 3) bf16 logits stay bf16 in HBM; f32 math in-kernel.
    c3 = 128
    pred3 = jax.random.normal(k5, (32, c3), dtype=jnp.float32).astype(jnp.bfloat16)
    target3 = jax.random.randint(k6, (32,), 0, c3, dtype=jnp.int32)
    loss3 = jax.block_until_ready(npu_label_smoothing_cross_entropy(
        pred3, target3, num_classes=c3, smooth_factor=smooth_factor))
    ref3 = _reference(pred3, target3, num_classes=c3, smooth_factor=smooth_factor)
    assert jnp.allclose(loss3, ref3, atol=1e-4, rtol=1e-4), (loss3, ref3)

    print("KERNEL_OK")
</pallas_src>

<mosaic_0001>
module attributes {stable_mosaic.version = 11 : i64} {
  func.func @_lsce_kernel(%arg0: i32, %arg1: memref<8x16xf32, #tpu.memory_space<vmem>>, %arg2: memref<8x1xi32, #tpu.memory_space<vmem>>, %arg3: memref<8x1xf32, #tpu.memory_space<vmem>>) attributes {dimension_semantics = [#tpu.dimension_semantics<parallel>], iteration_bounds = array<i64: 1>, scalar_prefetch = 0 : i64, scratch_operands = 0 : i64, tpu.core_type = #tpu.core_type<tc>, window_params = [{transform_indices = @transform_0, window_bounds = array<i64: 8, 16>}, {pipeline_mode = #tpu.pipeline_mode<synchronous>, transform_indices = @transform_1, window_bounds = array<i64: 8, 1>}, {transform_indices = @transform_2, window_bounds = array<i64: 8, 1>}]} {
    %c0 = arith.constant 0 : index
    %c0_0 = arith.constant 0 : index
    %0 = vector.load %arg2[%c0, %c0_0] : memref<8x1xi32, #tpu.memory_space<vmem>>, vector<8x1xi32>
    %c0_1 = arith.constant 0 : index
    %c0_2 = arith.constant 0 : index
    %1 = vector.load %arg1[%c0_1, %c0_2] : memref<8x16xf32, #tpu.memory_space<vmem>>, vector<8x16xf32>
    %cst = arith.constant dense<0xFF800000> : vector<8xf32>
    %2 = vector.multi_reduction <maximumf>, %1, %cst [1] : vector<8x16xf32> to vector<8xf32>
    %3 = vector.shape_cast %2 : vector<8xf32> to vector<8x1xf32>
    %4 = vector.broadcast %3 : vector<8x1xf32> to vector<8x16xf32>
    %5 = arith.subf %1, %4 : vector<8x16xf32>
    %6 = math.exp %5 : vector<8x16xf32>
    %cst_3 = arith.constant dense<0.000000e+00> : vector<8xf32>
    %7 = vector.multi_reduction <add>, %6, %cst_3 [1] : vector<8x16xf32> to vector<8xf32>
    %8 = vector.shape_cast %7 : vector<8xf32> to vector<8x1xf32>
    %9 = math.log %8 : vector<8x1xf32>
    %10 = arith.addf %3, %9 : vector<8x1xf32>
    %11 = tpu.iota {dimensions = array<i32: 1>} : vector<8x16xi32>
    %12 = vector.broadcast %0 : vector<8x1xi32> to vector<8x16xi32>
    %13 = arith.cmpi eq, %11, %12 : vector<8x16xi32>
    %cst_4 = arith.constant 0.899999976 : f32
    %cst_5 = arith.constant 0.00666666683 : f32
    %14 = vector.broadcast %cst_4 : f32 to vector<8x16xf32>
    %15 = vector.broadcast %cst_5 : f32 to vector<8x16xf32>
    %16 = arith.select %13, %14, %15 : vector<8x16xi1>, vector<8x16xf32>
    %17 = arith.mulf %16, %1 : vector<8x16xf32>
    %cst_6 = arith.constant dense<0.000000e+00> : vector<8xf32>
    %18 = vector.multi_reduction <add>, %17, %cst_6 [1] : vector<8x16xf32> to vector<8xf32>
    %19 = vector.shape_cast %18 : vector<8xf32> to vector<8x1xf32>
    %cst_7 = arith.constant 1.000000e+00 : f32
    %20 = vector.broadcast %cst_7 : f32 to vector<8x1xf32>
    %21 = arith.mulf %20, %10 : vector<8x1xf32>
    %22 = arith.subf %21, %19 : vector<8x1xf32>
    %c0_8 = arith.constant 0 : index
    %c0_9 = arith.constant 0 : index
    %23 = vector.load %arg3[%c0_8, %c0_9] : memref<8x1xf32, #tpu.memory_space<vmem>>, vector<8x1xf32>
    tpu.vector_store %arg3[%c0_8, %c0_9], %22 {strides = array<i32>} : memref<8x1xf32, #tpu.memory_space<vmem>>, vector<8x1xf32>,
    return
  }
  func.func @transform_0(%arg0: i32) -> (i32, i32) {
    %c0_i32 = arith.constant 0 : i32
    %c0_i32_0 = arith.constant 0 : i32
    return %arg0, %c0_i32 : i32, i32
  }
  func.func @transform_1(%arg0: i32) -> (i32, i32) {
    %c0_i32 = arith.constant 0 : i32
    %c0_i32_0 = arith.constant 0 : i32
    %c0_i32_1 = arith.constant 0 : i32
    return %c0_i32, %c0_i32_0 : i32, i32
  }
  func.func @transform_2(%arg0: i32) -> (i32, i32) {
    %c0_i32 = arith.constant 0 : i32
    %c0_i32_0 = arith.constant 0 : i32
    return %arg0, %c0_i32 : i32, i32
  }
}

</mosaic_0001>

<bundles_post_ra>
// kernel: tpu_custom_call.1
= control target key start
LH: loop header
LB: loop body
LE: loop exit
PB: predicated region body
PF: predicated region fallthrough
CT: control target
= control target key end

     0   :  { %vm13_vm0 = vcmask 130048   ;;  %v51_v1 = vmov 0   ;;  %v26_v7 = vlaneseq  ;;  %v52_v10 = vmov 0.006666667   ;;  %s80_s0 = inlined_call_operand.vmem [shape: f32[8,16], index: 0, kind: input, shape index: {}]   ;;  %s81_s1 = inlined_call_operand.vmem [shape: s32[8,1], index: 1, kind: input, shape index: {}]   ;;  %s82_s2 = inlined_call_operand.vmem [shape: f32[8,1], index: 2, kind: output, shape index: {}]  }
   0x1   :  { %v12_v0 = vld [vmem:[%s80_s0] sm:$0xff]  ;;  %46 = vset.pattern.permute.xlu0 %v51_v1  ;;  %vm38_vm2 = vcmask 7168  }
   0x2   :  { %v14_v2 = vsel %vm13_vm0, %v12_v0, -inf  ;;  %v11_v3 = vld [vmem:[%s81_s1] sm:$0xff]  ;;  %v27_v8 = vand.u32 127, %v26_v7 }
   0x3   :  { %15 = vmax.xlane.f32.xlu0 %v14_v2 }
  0x19   :  { %29 = vperm.xlu0 %46, %v11_v3  }
  0x8c   :  { %v16_v4 = vpop.xlane.xlu0 %15 }
  0x8d   :  { %v17_v5 = vsub.f32 %v12_v0, %v16_v4 }
  0x8f   :  { %v18_v6 = vmul.f32 1.442695, %v17_v5 }
  0x91   :  { %47 = vpow2.f32 %v18_v6 }
  0x94   :  { %v30_v9 = vpop.permute.xlu0 %29 }
  0x95   :  { %vm31_vm1 = vcmp.eq.s32.totalorder %v27_v8, %v30_v9 }
  0x96   :  { %v32_v11 = vsel %vm31_vm1, 0.9, %v52_v10 }
  0x97   :  { %v33_v12 = vmul.f32 %v32_v11, %v12_v0 }
  0x99   :  { %v34_v15 = vsel %vm13_vm0, %v33_v12, 0.0 }
  0x9e   :  { %v48_v13 = vpop.eup %47 }
  0x9f   :  { %v20_v14 = vsel %vm13_vm0, %v48_v13, 0.0 }
  0xa0   :  { %21 = vadd.xlane.f32.xlu1 %v20_v14 }
  0xa4   :  { %35 = vadd.xlane.f32.xlu1 %v34_v15 }
 0x129   :  { %v22_v16 = vpop.xlane.xlu1 %21 }
 0x12a   :  { %49 = vlog2.f32 %v22_v16 }
 0x12d   :  { %v36_v19 = vpop.xlane.xlu1 %35 }
 0x137   :  { %v50_v17 = vpop.eup %49 }
 0x138   :  { %v24_v18 = vmul.f32 0.6931472, %v50_v17 }
 0x13a   :  { %v25_v20 = vadd.f32 %v24_v18, %v16_v4 }
 0x13c   :  { %v37_v21 = vsub.f32 %v25_v20, %v36_v19 }
 0x13e   :  { %39 = vst.msk [vmem:[%s82_s2] sm:$0xff] %vm38_vm2, %v37_v21 }

</bundles_post_ra>
